<compile_context>
chip_gen: v6e
topology: v6e:2x2x1
jax: 0.10.0
libtpu: 0.0.40
codegen_flags: <defaults>
</compile_context>

<pallas_src>
import jax
import jax.numpy as jnp
from jax.experimental import pallas as pl
from jax.experimental.pallas import tpu as pltpu

_LANE = 128
_WIDE_LANES = (2048, 1024, 512, 256, 128)
_MIN_GRID_STEPS = 4  # >= 2 * num TensorCores (v7x has 2) for megacore sharding


def _tanh_kernel(x_ref, o_ref):
    # In-kernel promotion (int/bool -> f32) is free on the VPU under the DMA;
    # a single jnp.tanh is one EUP push per element -> kernel stays HBM-bound.
    o_ref[...] = jnp.tanh(x_ref[...].astype(o_ref.dtype))


def _min_sublane(itemsize):
    if itemsize >= 4:
        return 8
    if itemsize == 2:
        return 16
    return 32  # 1-byte dtypes (int8 / bool / fp8) pack 32 rows per vreg


def _target_block_bytes():
    """Per-generation block size (live VMEM ~= 4x this with in+out double buffers)."""
    try:
        kind = jax.devices()[0].device_kind.lower()
    except Exception:
        kind = ""
    if "v6" in kind or "v7" in kind:
        return 6 * 1024 * 1024  # 24 MiB live < 32 MiB default scoped VMEM (v6e/v7x)
    return 3 * 1024 * 1024      # 12 MiB live < 16 MiB default scoped VMEM (v5e/older)


def _row_tile(rows, bytes_per_row, sublane, target_block_bytes):
    cap = max(1, target_block_bytes // bytes_per_row)   # VMEM budget per block
    want = pl.cdiv(rows, _MIN_GRID_STEPS)               # keep both TCs busy
    tile = min(cap, want)
    tile = ((tile + sublane - 1) // sublane) * sublane  # legal sublane multiple
    if tile >= rows:
        tile = rows                                     # full dim is always legal
    return tile


def my_tanh(x):
    """Elementwise tanh matching CustomTanh.forward (shape preserved)."""
    orig_shape = x.shape
    in_dtype = x.dtype
    # torch.exp promotes integer/bool inputs to floating point.
    out_dtype = in_dtype if jnp.issubdtype(in_dtype, jnp.floating) else jnp.float32
    in_item = jnp.dtype(in_dtype).itemsize
    out_item = jnp.dtype(out_dtype).itemsize
    max_item = max(in_item, out_item)
    sublane = max(_min_sublane(in_item), _min_sublane(out_item))
    target = _target_block_bytes()

    n = x.size
    if n == 0:
        return jnp.zeros(orig_shape, dtype=out_dtype)

    if n % _LANE == 0:
        # Lane-dense path: widest last dim that divides n -> reshape is a free
        # (no-copy) view and every store is an unmasked, long vst burst.
        lane = next(l for l in _WIDE_LANES if n % l == 0)
        x2d = x.reshape(n // lane, lane)
    else:
        # Ragged path: collapse leading dims (free view); Pallas masks the
        # partial edge blocks -> no wrapper-side pad/slice HBM round trips.
        if x.ndim == 0:
            x2d = x.reshape(1, 1)
        elif x.ndim == 1:
            x2d = x.reshape(1, n)
        else:
            x2d = x.reshape(-1, orig_shape[-1])
    rows, cols = x2d.shape

    # Column tiling: full width whenever a single sublane-row block fits the
    # VMEM budget; otherwise chunk in 128-lane multiples (masked ragged tail).
    max_col_bytes = max(1, target // sublane)
    if cols * max_item > max_col_bytes:
        tile_cols = max(_LANE, (max_col_bytes // max_item) // _LANE * _LANE)
    else:
        tile_cols = cols
    tile_rows = _row_tile(rows, tile_cols * max_item, sublane, target)

    grid = (pl.cdiv(rows, tile_rows), pl.cdiv(cols, tile_cols))

    out2d = pl.pallas_call(
        _tanh_kernel,
        out_shape=jax.ShapeDtypeStruct((rows, cols), out_dtype),
        grid_spec=pltpu.PrefetchScalarGridSpec(
            num_scalar_prefetch=0,
            grid=grid,
            in_specs=[pl.BlockSpec((tile_rows, tile_cols), lambda i, j: (i, j))],
            out_specs=pl.BlockSpec((tile_rows, tile_cols), lambda i, j: (i, j)),
        ),
        compiler_params=pltpu.CompilerParams(
            dimension_semantics=("parallel", "parallel"),
        ),
        cost_estimate=pl.CostEstimate(
            flops=0,
            transcendentals=n,
            bytes_accessed=n * (in_item + out_item),
        ),
    )(x2d)

    return out2d.reshape(orig_shape)


if __name__ == "__main__":
    key = jax.random.PRNGKey(0)

    # Small NCHW-like input consistent with the module's forward.
    x = jax.random.normal(key, (2, 4, 16, 16), dtype=jnp.float32)
    y = my_tanh(x)
    jax.block_until_ready(y)
    assert y.shape == x.shape and y.dtype == x.dtype
    assert jnp.max(jnp.abs(y - jnp.tanh(x))) < 1e-5

    # Ragged (non multiple-of-128) shape: masked-edge-block path, no padding.
    x2 = jax.random.normal(jax.random.PRNGKey(1), (3, 5, 7), dtype=jnp.float32)
    y2 = my_tanh(x2)
    jax.block_until_ready(y2)
    assert y2.shape == x2.shape
    assert jnp.max(jnp.abs(y2 - jnp.tanh(x2))) < 1e-5

    # Integer input: promotion to float32 happens inside the kernel body.
    x3 = jax.random.randint(jax.random.PRNGKey(2), (4, 33), -3, 4, dtype=jnp.int32)
    y3 = my_tanh(x3)
    jax.block_until_ready(y3)
    assert y3.shape == x3.shape and y3.dtype == jnp.float32
    assert jnp.max(jnp.abs(y3 - jnp.tanh(x3.astype(jnp.float32)))) < 1e-5

    print("KERNEL_OK")
</pallas_src>

<mosaic_0001>
module attributes {stable_mosaic.version = 11 : i64} {
  func.func @_tanh_kernel(%arg0: i32, %arg1: i32, %arg2: memref<1x2048xf32, #tpu.memory_space<vmem>>, %arg3: memref<1x2048xf32, #tpu.memory_space<vmem>>) attributes {dimension_semantics = [#tpu.dimension_semantics<parallel>, #tpu.dimension_semantics<parallel>], iteration_bounds = array<i64: 1, 1>, scalar_prefetch = 0 : i64, scratch_operands = 0 : i64, tpu.core_type = #tpu.core_type<tc>, window_params = [{transform_indices = @transform_0, window_bounds = array<i64: 1, 2048>}, {transform_indices = @transform_1, window_bounds = array<i64: 1, 2048>}]} {
    %c0 = arith.constant 0 : index
    %c0_0 = arith.constant 0 : index
    %0 = vector.load %arg2[%c0, %c0_0] : memref<1x2048xf32, #tpu.memory_space<vmem>>, vector<1x2048xf32>
    %1 = math.tanh %0 : vector<1x2048xf32>
    %c0_1 = arith.constant 0 : index
    %c0_2 = arith.constant 0 : index
    %2 = vector.load %arg3[%c0_1, %c0_2] : memref<1x2048xf32, #tpu.memory_space<vmem>>, vector<1x2048xf32>
    tpu.vector_store %arg3[%c0_1, %c0_2], %1 {strides = array<i32>} : memref<1x2048xf32, #tpu.memory_space<vmem>>, vector<1x2048xf32>,
    return
  }
  func.func @transform_0(%arg0: i32, %arg1: i32) -> (i32, i32) {
    %c0_i32 = arith.constant 0 : i32
    return %arg0, %arg1 : i32, i32
  }
  func.func @transform_1(%arg0: i32, %arg1: i32) -> (i32, i32) {
    %c0_i32 = arith.constant 0 : i32
    return %arg0, %arg1 : i32, i32
  }
}

</mosaic_0001>

<bundles_post_ra>
// kernel: tpu_custom_call.1
= control target key start
LH: loop header
LB: loop body
LE: loop exit
PB: predicated region body
PF: predicated region fallthrough
CT: control target
= control target key end

     0   :  { %6 = vsyncpa [#allocation3], 0  ;;  %s110_s0 = inlined_call_operand.hbm [shape: f32[1,2048], index: 0, kind: input, shape index: {}]   ;;  %s111_s1 = inlined_call_operand.hbm [shape: f32[1,2048], index: 1, kind: output, shape index: {}]  }
   0x1   :  { %7 = vsyncpa [#allocation4], 0  ;;  %s92_s6 = smov [#allocation2]  }
   0x2   :  { %s14_s7 = sshll.u32 %s92_s6, 4  ;;  %s15_s7 = int_to_ptr.vmem [resolvable:$true] %s14_s7 }
   0x3   :  { %s56_s8 = scalar_lea.vmem %s15_s7, 256  ;;  %p61_p1 = scmp.lt.s32.totalorder %s15_s7, %s15_s7 }
   0x4   :  { %p57_p0 = scmp.ne.s32.totalorder %s15_s7, %s56_s8  ;;  %p62_p2 = scmp.lt.s32.totalorder %s56_s8, %s56_s8 }
   0x6   :  { %p63_p3 = por %p62_p2, %p61_p1 }
   0x8   :  { %p64_p4 = pnand %p63_p3, %p57_p0 }
   0xa   :  { %67 = shalt.err (!%p64_p4)
}
   0xb   :  { %17 = dma.hbm_to_vmem [thread:$0]  %s110_s0, 256, %s15_s7, [#allocation3]  }
   0xc   :  { %88 = dma.done.wait [#allocation3], 256  }
   0xd   :  { %89 = vsyncadd [#allocation3], 4294967040  ;;  %v21_v0 = vld [vmem:[#allocation2] sm:$0xff]  ;;  %v22_v1 = vld [vmem:[#allocation2 + $0x8] sm:$0xff]  ;;  %s93_s11 = smov [#allocation5]  }
   0xe   :  { %44 = vtanh.f32 %v21_v0  ;;  %s33_s12 = sshll.u32 %s93_s11, 4  ;;  %s34_s12 = int_to_ptr.vmem [resolvable:$true] %s33_s12 }
   0xf   :  { %46 = vtanh.f32 %v22_v1  ;;  %s68_s13 = scalar_lea.vmem %s34_s12, 256  ;;  %p73_p6 = scmp.lt.s32.totalorder %s34_s12, %s34_s12 }
  0x10   :  { %p69_p5 = scmp.ne.s32.totalorder %s34_s12, %s68_s13  ;;  %p74_p7 = scmp.lt.s32.totalorder %s68_s13, %s68_s13 }
  0x12   :  { %p75_p8 = por %p74_p7, %p73_p6 }
  0x14   :  { %p76_p9 = pnand %p75_p8, %p69_p5 }
  0x1b   :  { %v45_v2 = vpop.eup %44 }
  0x1c   :  { %v47_v3 = vpop.eup %46  ;;  %25 = vst [vmem:[#allocation5] sm:$0xff] %v45_v2 }
  0x1d   :  { %26 = vst [vmem:[#allocation5 + $0x8] sm:$0xff] %v47_v3 }
  0x1e   :  { %79 = shalt.err (!%p76_p9)
}
  0x1f   :  { %36 = dma.vmem_to_hbm [thread:$0]  %s34_s12, 256, %s111_s1, [#allocation4]  }
  0x20   :  { %90 = dma.done.wait [#allocation4], 256  }
  0x21   :  { %91 = vsyncadd [#allocation4], 4294967040 }
  0x22   :  { %40 = vsyncpa [#allocation3], 1 }
  0x23   :  { %41 = vsyncpa [#allocation4], 1 }

</bundles_post_ra>
